<compile_context>
chip_gen: v7x
topology: tpu7x:2x2x1
jax: 0.10.0
libtpu: 0.0.40
codegen_flags: <defaults>
</compile_context>

<pallas_src>
import functools

import jax
import jax.numpy as jnp
from jax.experimental import pallas as pl
from jax.experimental.pallas import tpu as pltpu


def _layernorm_kernel(*refs, eps, use_scale, use_center):
    i = 0
    x_ref = refs[i]; i += 1
    scale_ref = None
    center_ref = None
    if use_scale:
        scale_ref = refs[i]; i += 1
    if use_center:
        center_ref = refs[i]; i += 1
    o_ref = refs[i]

    x = x_ref[...].astype(jnp.float32)
    n = x.shape[-1]

    mean = jnp.sum(x, axis=-1, keepdims=True) * jnp.float32(1.0 / n)
    diff = x - mean
    # torch.Tensor.std defaults to the unbiased estimator (ddof=1); rlkit adds
    # eps to the std (not to the variance).
    var_unbiased = jnp.sum(diff * diff, axis=-1, keepdims=True) * jnp.float32(1.0 / (n - 1))
    std = jnp.sqrt(var_unbiased)
    # Narrow (rows, 1) EXACT reciprocal followed by a broadcast multiply; the
    # approximate EUP path saves nothing in this HBM-bound kernel and costs accuracy.
    inv = pl.reciprocal(std + jnp.float32(eps), approx=False)
    out = diff * inv
    if use_scale:
        out = out * scale_ref[...].astype(jnp.float32)
    if use_center:
        out = out + center_ref[...].astype(jnp.float32)
    o_ref[...] = out.astype(o_ref.dtype)


def _round_up(x, m):
    return -(-x // m) * m


def _vmem_caps():
    """(tile_budget_bytes, vmem_limit_cap_bytes), generation-aware."""
    cap = None
    try:
        cap = int(getattr(pltpu.get_tpu_info(), "vmem_capacity_bytes", 0)) or None
    except Exception:
        cap = None
    if cap is None:
        cap = 64 << 20  # conservative (v7x-sized) fallback
    if cap >= (96 << 20):       # v5e / v6e: 128 MiB physical VMEM
        return 56 << 20, 96 << 20
    return 24 << 20, 40 << 20   # v7x: 64 MiB per TC, leave headroom for f32 temps


def _num_tensorcores():
    """TensorCores per chip (2 on v7x, 1 on v5e/v6e); conservative fallback = 1."""
    try:
        info = pltpu.get_tpu_info()
        for attr in ("num_cores", "tensorcores_per_chip", "num_tensorcores",
                     "cores_per_chip"):
            v = getattr(info, attr, None)
            if v:
                return max(1, min(2, int(v)))
    except Exception:
        pass
    try:
        if "v7" in jax.devices()[0].device_kind.lower():
            return 2
    except Exception:
        pass
    return 1


def _choose_block_rows(batch, features, itemsize, vmem_budget_bytes, num_tc):
    """Largest row tile (multiple of 8) whose double-buffered in/out blocks plus
    f32 intermediates (x upcast, diff, out, temp) fit the per-call VMEM budget."""
    per_row = (2 * features * itemsize      # input block, double-buffered
               + 2 * features * itemsize    # output block, double-buffered
               + 4 * features * 4)          # f32 intermediates live in the body
    max_rows = max(8, vmem_budget_bytes // max(per_row, 1))
    rounded_batch = _round_up(batch, 8)

    block_rows = 8
    for cand in (8192, 4096, 2048, 1024, 512, 256, 128, 64, 32, 16, 8):
        if cand <= max_rows:
            block_rows = cand
            break
    block_rows = min(block_rows, rounded_batch)

    # v7x only: keep the grid balanced across the 2 TensorCores.
    if num_tc > 1 and rounded_batch > 8:
        per_core = _round_up(-(-rounded_batch // num_tc), 8)
        if block_rows > per_core:
            block_rows = per_core
        steps = -(-rounded_batch // block_rows)
        if steps > 1 and steps % num_tc != 0:
            target = _round_up(steps, num_tc)
            block_rows = max(8, _round_up(-(-rounded_batch // target), 8))
    return block_rows


def layer_norm(x, scale_param=None, center_param=None, *, center=True, scale=False,
               eps=1e-6, block_rows=None, vmem_budget_bytes=None):
    """Pallas LayerNorm matching rlkit LayerNorm.forward.

    x: (batch, features). scale_param / center_param: (features,), only read when
    the corresponding flag is set.
    """
    batch, features = x.shape
    assert features >= 2, "LayerNorm with unbiased std requires features >= 2"
    itemsize = jnp.dtype(x.dtype).itemsize

    budget, limit_cap = _vmem_caps()
    if vmem_budget_bytes is not None:
        budget = vmem_budget_bytes
    num_tc = _num_tensorcores()

    if block_rows is None:
        block_rows = _choose_block_rows(batch, features, itemsize, budget, num_tc)

    grid_steps = pl.cdiv(batch, block_rows)   # ragged tail handled by boundary masking

    # x BlockSpec; deeper buffering only when per-step tiles are tiny.
    tile_bytes = block_rows * features * itemsize
    if tile_bytes < (1 << 20) and grid_steps > 2:
        x_spec = pl.BlockSpec((block_rows, features), lambda i: (i, 0),
                              pipeline_mode=pl.Buffered(3))
    else:
        x_spec = pl.BlockSpec((block_rows, features), lambda i: (i, 0))

    # Only DMA the parameters that are actually used.
    operands = [x]
    in_specs = [x_spec]
    if scale:
        assert scale_param is not None
        operands.append(scale_param.reshape(1, features))
        in_specs.append(pl.BlockSpec((1, features), lambda i: (0, 0)))
    if center:
        assert center_param is not None
        operands.append(center_param.reshape(1, features))
        in_specs.append(pl.BlockSpec((1, features), lambda i: (0, 0)))

    kernel = functools.partial(
        _layernorm_kernel, eps=eps, use_scale=scale, use_center=center)

    # Honest VMEM accounting (buffers + f32 intermediates + param rows), clamped
    # under the generation-specific physical limit.
    footprint = (2 * tile_bytes                       # input, double-buffered
                 + 2 * tile_bytes                     # output, double-buffered
                 + 4 * block_rows * features * 4      # f32 intermediates in the body
                 + 4 * features * 4)                  # parameter rows
    vmem_limit = int(min(max(footprint + (4 << 20), 16 << 20), limit_cap))

    out = pl.pallas_call(
        kernel,
        out_shape=jax.ShapeDtypeStruct((batch, features), x.dtype),
        grid_spec=pltpu.PrefetchScalarGridSpec(
            num_scalar_prefetch=0,
            grid=(grid_steps,),
            in_specs=in_specs,
            out_specs=pl.BlockSpec((block_rows, features), lambda i: (i, 0)),
        ),
        compiler_params=pltpu.CompilerParams(
            dimension_semantics=("parallel",),
            vmem_limit_bytes=vmem_limit),
    )(*operands)
    return out


def layer_norm_ref(x, scale_param, center_param, *, center=True, scale=False, eps=1e-6):
    x32 = x.astype(jnp.float32)
    mean = jnp.mean(x32, axis=-1, keepdims=True)
    n = x.shape[-1]
    var = jnp.sum((x32 - mean) ** 2, axis=-1, keepdims=True) / (n - 1)
    std = jnp.sqrt(var)
    out = (x32 - mean) / (std + eps)
    if scale:
        out = out * scale_param
    if center:
        out = out + center_param
    return out.astype(x.dtype)


if __name__ == "__main__":
    key = jax.random.PRNGKey(0)
    batch, features = 16, 32

    x = jax.random.normal(key, (batch, features), dtype=jnp.float32)

    # Deterministic parameters matching nn.Parameter defaults in __init__:
    # scale_param = ones(features), center_param = zeros(features).
    scale_param = jnp.ones((features,), dtype=jnp.float32)
    center_param = jnp.zeros((features,), dtype=jnp.float32)

    # Module defaults: center=True, scale=False, eps=1e-6.
    ref = layer_norm_ref(x, scale_param, center_param,
                         center=True, scale=False, eps=1e-6)
    out = layer_norm(x, scale_param, center_param,
                     center=True, scale=False, eps=1e-6)
    out = jax.block_until_ready(out)
    assert out.shape == x.shape and out.dtype == x.dtype
    assert jnp.allclose(out, ref, atol=1e-5, rtol=1e-5), "mismatch (default path)"

    # Non-divisible batch exercises the masked-tail path; also enables scale.
    xb = jax.random.normal(jax.random.PRNGKey(1), (13, features), dtype=jnp.float32)
    scale_b = 1.0 + 0.1 * jax.random.normal(jax.random.PRNGKey(2), (features,), jnp.float32)
    out_b = jax.block_until_ready(
        layer_norm(xb, scale_b, center_param, center=True, scale=True, eps=1e-6))
    ref_b = layer_norm_ref(xb, scale_b, center_param, center=True, scale=True, eps=1e-6)
    assert out_b.shape == xb.shape
    assert jnp.allclose(out_b, ref_b, atol=1e-5, rtol=1e-5), "mismatch (tail/scale path)"

    print("KERNEL_OK")
</pallas_src>

<mosaic_0001>
module attributes {stable_mosaic.version = 11 : i64} {
  func.func @_layernorm_kernel(%arg0: i32, %arg1: memref<16x32xf32, #tpu.memory_space<vmem>>, %arg2: memref<1x32xf32, #tpu.memory_space<vmem>>, %arg3: memref<16x32xf32, #tpu.memory_space<vmem>>) attributes {dimension_semantics = [#tpu.dimension_semantics<parallel>], iteration_bounds = array<i64: 1>, scalar_prefetch = 0 : i64, scratch_operands = 0 : i64, tpu.core_type = #tpu.core_type<tc>, window_params = [{transform_indices = @transform_0, window_bounds = array<i64: 16, 32>}, {pipeline_mode = #tpu.pipeline_mode<synchronous>, transform_indices = @transform_1, window_bounds = array<i64: 1, 32>}, {transform_indices = @transform_2, window_bounds = array<i64: 16, 32>}]} {
    %c0 = arith.constant 0 : index
    %c0_0 = arith.constant 0 : index
    %0 = vector.load %arg1[%c0, %c0_0] : memref<16x32xf32, #tpu.memory_space<vmem>>, vector<16x32xf32>
    %cst = arith.constant dense<0.000000e+00> : vector<16xf32>
    %1 = vector.multi_reduction <add>, %0, %cst [1] : vector<16x32xf32> to vector<16xf32>
    %2 = vector.shape_cast %1 : vector<16xf32> to vector<16x1xf32>
    %cst_1 = arith.constant 3.125000e-02 : f32
    %3 = vector.broadcast %cst_1 : f32 to vector<16x1xf32>
    %4 = arith.mulf %2, %3 : vector<16x1xf32>
    %5 = vector.broadcast %4 : vector<16x1xf32> to vector<16x32xf32>
    %6 = arith.subf %0, %5 : vector<16x32xf32>
    %7 = arith.mulf %6, %6 : vector<16x32xf32>
    %cst_2 = arith.constant dense<0.000000e+00> : vector<16xf32>
    %8 = vector.multi_reduction <add>, %7, %cst_2 [1] : vector<16x32xf32> to vector<16xf32>
    %9 = vector.shape_cast %8 : vector<16xf32> to vector<16x1xf32>
    %cst_3 = arith.constant 0.0322580636 : f32
    %10 = vector.broadcast %cst_3 : f32 to vector<16x1xf32>
    %11 = arith.mulf %9, %10 : vector<16x1xf32>
    %12 = math.sqrt %11 : vector<16x1xf32>
    %cst_4 = arith.constant 9.99999997E-7 : f32
    %13 = vector.broadcast %cst_4 : f32 to vector<16x1xf32>
    %14 = arith.addf %12, %13 : vector<16x1xf32>
    %15 = tpu.reciprocal %14 : vector<16x1xf32> -> vector<16x1xf32>
    %16 = vector.broadcast %15 : vector<16x1xf32> to vector<16x32xf32>
    %17 = arith.mulf %6, %16 : vector<16x32xf32>
    %c0_5 = arith.constant 0 : index
    %c0_6 = arith.constant 0 : index
    %18 = vector.load %arg2[%c0_5, %c0_6] : memref<1x32xf32, #tpu.memory_space<vmem>>, vector<1x32xf32>
    %19 = vector.broadcast %18 : vector<1x32xf32> to vector<16x32xf32>
    %20 = arith.addf %17, %19 : vector<16x32xf32>
    %c0_7 = arith.constant 0 : index
    %c0_8 = arith.constant 0 : index
    %21 = vector.load %arg3[%c0_7, %c0_8] : memref<16x32xf32, #tpu.memory_space<vmem>>, vector<16x32xf32>
    tpu.vector_store %arg3[%c0_7, %c0_8], %20 {strides = array<i32>} : memref<16x32xf32, #tpu.memory_space<vmem>>, vector<16x32xf32>,
    return
  }
  func.func @transform_0(%arg0: i32) -> (i32, i32) {
    %c0_i32 = arith.constant 0 : i32
    %c0_i32_0 = arith.constant 0 : i32
    return %arg0, %c0_i32 : i32, i32
  }
  func.func @transform_1(%arg0: i32) -> (i32, i32) {
    %c0_i32 = arith.constant 0 : i32
    %c0_i32_0 = arith.constant 0 : i32
    %c0_i32_1 = arith.constant 0 : i32
    return %c0_i32, %c0_i32_0 : i32, i32
  }
  func.func @transform_2(%arg0: i32) -> (i32, i32) {
    %c0_i32 = arith.constant 0 : i32
    %c0_i32_0 = arith.constant 0 : i32
    return %arg0, %c0_i32 : i32, i32
  }
}

</mosaic_0001>

<bundles_post_ra>
// kernel: tpu_custom_call.1
= control target key start
LH: loop header
LB: loop body
LE: loop exit
PB: predicated region body
PF: predicated region fallthrough
CT: control target
= control target key end

     0   :  { %7 = vsyncpa [#allocation3], 0  ;;  %s216_s0 = inlined_call_operand.hbm [shape: f32[16,32], index: 0, kind: input, shape index: {}]   ;;  %s217_s1 = inlined_call_operand.vmem [shape: f32[1,32], index: 1, kind: input, shape index: {}]   ;;  %s218_s2 = inlined_call_operand.hbm [shape: f32[16,32], index: 2, kind: output, shape index: {}]  }
   0x1   :  { %8 = vsyncpa [#allocation4], 0  ;;  %s158_s9 = smov [#allocation2]   ;;  %s110_s13 = scalar_lea.hbm %s216_s0, 256 }
   0x2   :  { %s14_s10 = sshll.u32 %s158_s9, 4  ;;  %p111_p0 = scmp.ne.s32.totalorder %s216_s0, %s110_s13  ;;  %s15_s10 = int_to_ptr.vmem [resolvable:$true] %s14_s10 }
   0x3   :  { %p114_p1 = scmp.lt.u32.totalorder %s110_s13, %s216_s0 }
   0x5   :  { %p116_p2 = pnand %p114_p1, %p111_p0 }
   0x7   :  { %119 = shalt.err (!%p116_p2)
}
   0x8   :  { %s120_s18 = scalar_lea.vmem %s15_s10, 256  ;;  %p125_p4 = scmp.lt.s32.totalorder %s15_s10, %s15_s10 }
   0x9   :  { %p121_p3 = scmp.ne.s32.totalorder %s15_s10, %s120_s18  ;;  %p126_p5 = scmp.lt.s32.totalorder %s120_s18, %s120_s18 }
   0xb   :  { %p127_p6 = por %p126_p5, %p125_p4 }
   0xd   :  { %p128_p7 = pnand %p127_p6, %p121_p3 }
   0xf   :  { %131 = shalt.err (!%p128_p7)
}
  0x10   :  { %s159_s19 = smov 128   ;;  %s160_s20 = smov 8  }
  0x11   :  { %20 = dma.hbm_to_vmem [thread:$0]  %s216_s0, 256, %s15_s10, [#allocation3], %s159_s19, %s159_s19, %s160_s20  }
  0x12   :  { %154 = dma.done.wait [#allocation3], 256  }
  0x13   :  { %155 = vsyncadd [#allocation3], 4294967040  ;;  %vm28_vm0 = vcmask 261120   ;;  %v26_v0 = vld [vmem:[#allocation2] sm:$0xff]  ;;  %v27_v1 = vld [vmem:[#allocation2 + $0x8] sm:$0xff]  ;;  %s161_s24 = smov [#allocation5]  }
  0x14   :  { %v29_v2 = vsel %vm28_vm0, %v26_v0, 0.0  ;;  %v32_v3 = vsel %vm28_vm0, %v27_v1, 0.0  ;;  %v97_v31 = vld [vmem:[%s217_s1] ss:$0 sm:$0xff]  ;;  %s85_s25 = sshll.u32 %s161_s24, 4  ;;  %s86_s25 = int_to_ptr.vmem [resolvable:$true] %s85_s25 }
  0x15   :  { %30 = vadd.xlane.f32.xlu0 %v29_v2  ;;  %s132_s26 = scalar_lea.vmem %s86_s25, 256  ;;  %p137_p9 = scmp.lt.s32.totalorder %s86_s25, %s86_s25 }
  0x16   :  { %p133_p8 = scmp.ne.s32.totalorder %s86_s25, %s132_s26  ;;  %p138_p10 = scmp.lt.s32.totalorder %s132_s26, %s132_s26 }
  0x18   :  { %p139_p11 = por %p138_p10, %p137_p9 }
  0x19   :  { %33 = vadd.xlane.f32.xlu0 %v32_v3 }
  0x1a   :  { %p140_p12 = pnand %p139_p11, %p133_p8 }
  0xa2   :  { %v31_v4 = vpop.xlane.xlu0 %30 }
  0xa3   :  { %v35_v5 = vmul.f32 0.03125, %v31_v4 }
  0xa5   :  { %v37_v6 = vsub.f32 %v26_v0, %v35_v5 }
  0xa6   :  { %v34_v7 = vpop.xlane.xlu0 %33 }
  0xa7   :  { %v36_v8 = vmul.f32 0.03125, %v34_v7  ;;  %v39_v9 = vmul.f32 %v37_v6, %v37_v6 }
  0xa9   :  { %v38_v10 = vsub.f32 %v27_v1, %v36_v8  ;;  %v41_v11 = vsel %vm28_vm0, %v39_v9, 0.0 }
  0xaa   :  { %42 = vadd.xlane.f32.xlu1 %v41_v11 }
  0xab   :  { %v40_v12 = vmul.f32 %v38_v10, %v38_v10 }
  0xad   :  { %v44_v13 = vsel %vm28_vm0, %v40_v12, 0.0 }
  0xae   :  { %45 = vadd.xlane.f32.xlu1 %v44_v13 }
 0x137   :  { %v43_v14 = vpop.xlane.xlu1 %42 }
 0x138   :  { %v47_v15 = vmul.f32 0.032258064, %v43_v14 }
 0x13a   :  { %102 = vrsqrt.f32 %v47_v15  ;;  %vm51_vm1 = vcmp.eq.f32.partialorder %v47_v15, inf  ;;  %v54_v20 = vand.u32 2147483648, %v47_v15  ;;  %vm53_vm2 = vcmp.eq.f32.partialorder %v47_v15, 0.0 }
 0x13b   :  { %v46_v16 = vpop.xlane.xlu1 %45 }
 0x13c   :  { %v48_v17 = vmul.f32 0.032258064, %v46_v16 }
 0x13e   :  { %104 = vrsqrt.f32 %v48_v17  ;;  %vm58_vm3 = vcmp.eq.f32.partialorder %v48_v17, inf  ;;  %v61_v26 = vand.u32 2147483648, %v48_v17  ;;  %vm60_vm4 = vcmp.eq.f32.partialorder %v48_v17, 0.0 }
 0x144   :  { %v103_v18 = vpop.eup %102 }
 0x145   :  { %v50_v19 = vmul.f32 %v103_v18, %v47_v15 }
 0x147   :  { %v52_v21 = vsel %vm51_vm1, %v47_v15, %v50_v19 }
 0x148   :  { %v105_v22 = vpop.eup %104  ;;  %v55_v23 = vsel %vm53_vm2, %v54_v20, %v52_v21 }
 0x149   :  { %v63_v24 = vadd.f32 1e-06, %v55_v23  ;;  %v57_v25 = vmul.f32 %v105_v22, %v48_v17 }
 0x14b   :  { %v59_v27 = vsel %vm58_vm3, %v48_v17, %v57_v25  ;;  %106 = vrcp.f32 %v63_v24 }
 0x14c   :  { %v62_v28 = vsel %vm60_vm4, %v61_v26, %v59_v27 }
 0x14d   :  { %v64_v29 = vadd.f32 1e-06, %v62_v28 }
 0x14f   :  { %108 = vrcp.f32 %v64_v29 }
 0x155   :  { %v107_v30 = vpop.eup %106 }
 0x156   :  { %v67_v32 = vmul.f32 %v107_v30, %v37_v6 }
 0x158   :  { %v76_v33 = vadd.f32 %v97_v31, %v67_v32 }
 0x159   :  { %v109_v34 = vpop.eup %108 }
 0x15a   :  { %v68_v35 = vmul.f32 %v109_v34, %v38_v10  ;;  %78 = vst.msk [vmem:[#allocation5] sm:$0xff] %vm28_vm0, %v76_v33 }
 0x15c   :  { %v77_v36 = vadd.f32 %v97_v31, %v68_v35 }
 0x15e   :  { %79 = vst.msk [vmem:[#allocation5 + $0x8] sm:$0xff] %vm28_vm0, %v77_v36 }
 0x15f   :  { %143 = shalt.err (!%p140_p12)
}
 0x160   :  { %s144_s28 = scalar_lea.hbm %s218_s2, 256 }
 0x161   :  { %p145_p13 = scmp.ne.s32.totalorder %s218_s2, %s144_s28  ;;  %p148_p0 = scmp.lt.u32.totalorder %s144_s28, %s218_s2 }
 0x163   :  { %p150_p1 = pnand %p148_p0, %p145_p13 }
 0x165   :  { %153 = shalt.err (!%p150_p1)
}
 0x166   :  { %91 = dma.vmem_to_hbm [thread:$0]  %s86_s25, 256, %s218_s2, [#allocation4], %s159_s19, %s159_s19, %s160_s20  }
 0x167   :  { %156 = dma.done.wait [#allocation4], 256  }
 0x168   :  { %157 = vsyncadd [#allocation4], 4294967040 }
 0x169   :  { %95 = vsyncpa [#allocation3], 1 }
 0x16a   :  { %96 = vsyncpa [#allocation4], 1 }

</bundles_post_ra>
